<compile_context>
chip_gen: v5e
topology: v5e:2x2
jax: 0.10.0
libtpu: 0.0.40
codegen_flags: <defaults>
</compile_context>

<pallas_src>
import jax
import jax.numpy as jnp
from jax.experimental import pallas as pl
from jax.experimental.pallas import tpu as pltpu

EPS = 1e-9
SLOPE = 1000.0

# Per-grid-step VMEM budget for (one input block + one output block); the
# pipeline double-buffers, so total stays <= ~24 MiB (within the 32 MiB limit
# we request, and within scoped-VMEM headroom on v5e/v6e/v7x).
_PER_STEP_VMEM_BUDGET = 12 * 1024 * 1024


def _cdiv(a, b):
    return -(-a // b)


def _round_up(x, m):
    return ((x + m - 1) // m) * m


def _choose_tile_h(n, h, w, in_itemsize):
    """Row-tile TH: a multiple of 8 (or full H), VMEM-budgeted, >=2 grid steps."""
    if h <= 8:
        return h
    bytes_per_row = 3 * w * (in_itemsize + 4)          # input + f32 output
    th = (_PER_STEP_VMEM_BUDGET // max(bytes_per_row, 1)) // 8 * 8
    th = max(8, min(th, h))
    # v7x megacore: ensure the grid has at least 2 iterations when possible.
    if n * _cdiv(h, th) < 2:
        th = max(8, min(th, _round_up(_cdiv(h, 2), 8)))
    if th != h and th % 8 != 0:                        # safety (shouldn't hit)
        th = max(8, th // 8 * 8)
    return th


def _advanced_hsv_kernel(thr_ref, x_ref, o_ref):
    # thr_ref: SMEM (3,) f32 = [color_thr, black_thr, white_thr]
    # x_ref:   VMEM (1, 3, TH, W) input dtype (cast to f32 here, not in wrapper)
    # o_ref:   VMEM (1, 3, TH, W) f32
    color_thr = thr_ref[0]
    black_thr = thr_ref[1]
    white_thr = thr_ref[2]

    r = x_ref[0, 0].astype(jnp.float32)
    g = x_ref[0, 1].astype(jnp.float32)
    b = x_ref[0, 2].astype(jnp.float32)

    max_c = jnp.maximum(jnp.maximum(r, g), b)
    min_c = jnp.minimum(jnp.minimum(r, g), b)

    # argmax over channels, first-occurrence tie-breaking (torch.max semantics)
    is0 = (r >= g) & (r >= b)
    is1 = jnp.logical_not(is0) & (g >= b)
    is2 = jnp.logical_not(is0 | is1)

    c = max_c - min_c
    inv = 1.0 / (c + EPS)              # shared reciprocal for the 3 hue branches
    zero = jnp.zeros_like(c)

    # (g-b)/(c+eps) is in (-1, 1)  =>  mod 6 is a single compare+select wrap.
    v0 = (g - b) * inv
    h = jnp.where(is0, jnp.where(v0 < 0.0, v0 + 6.0, v0), zero)
    h = jnp.where(is1, (b - r) * inv + 2.0, h)
    h = jnp.where(is2, (r - g) * inv + 4.0, h)

    # Saturation / lightness kept bit-identical to the reference expressions,
    # since they feed the exact-equality mask below.
    s = jnp.where(c != 0.0, c / (1.0 - jnp.abs(max_c + min_c - 1.0)), zero)
    l = (max_c + min_c) * 0.5

    def hard_sigmoid(v):
        return jnp.clip(v * SLOPE - 0.01, 0.0, 1.0)

    cond = ((hard_sigmoid(s - color_thr) == 1.0)
            & (hard_sigmoid(black_thr - l) == 0.0)
            & (hard_sigmoid(l - white_thr) == 0.0))

    def hue_channel(nval):
        k = nval + h                              # in [nval, nval + 6)
        k = jnp.where(k >= 6.0, k - 6.0, k)       # mod 6 with a single wrap
        return 1.0 - jnp.clip(jnp.minimum(k, 4.0 - k), 0.0, 1.0)

    # Interleave each hue-channel's compute with its (full-tile, unmasked
    # when W % 128 == 0) store to keep peak live vregs low.
    o_ref[0, 0] = jnp.where(cond, hue_channel(5.0), l)
    o_ref[0, 1] = jnp.where(cond, hue_channel(3.0), l)
    o_ref[0, 2] = jnp.where(cond, hue_channel(1.0), l)


def advanced_hsv_alt(image, color_thr=0.04, black_thr=0.1, white_thr=0.9):
    """Pallas TPU implementation of AdvancedHSValt.forward.

    image: (N, 3, H, W), any float/integer dtype (cast to f32 in-kernel).
    returns (N, 3, H, W) float32.
    """
    n, ch, h, w = image.shape
    assert ch == 3, "AdvancedHSValt expects 3 (RGB) channels"

    th = _choose_tile_h(n, h, w, jnp.dtype(image.dtype).itemsize)
    grid = (n, _cdiv(h, th))

    thresholds = jnp.asarray([color_thr, black_thr, white_thr], dtype=jnp.float32)

    return pl.pallas_call(
        _advanced_hsv_kernel,
        out_shape=jax.ShapeDtypeStruct((n, 3, h, w), jnp.float32),
        grid=grid,
        in_specs=[
            pl.BlockSpec(memory_space=pltpu.MemorySpace.SMEM),   # thresholds
            pl.BlockSpec((1, 3, th, w), lambda ni, hi: (ni, 0, hi, 0)),
        ],
        out_specs=pl.BlockSpec((1, 3, th, w), lambda ni, hi: (ni, 0, hi, 0)),
        compiler_params=pltpu.CompilerParams(
            dimension_semantics=("parallel", "parallel"),
            vmem_limit_bytes=32 * 1024 * 1024),
    )(thresholds, image)


def _reference_jax(image, color_thr=0.04, black_thr=0.1, white_thr=0.9):
    """Pure-JAX reference mirroring the PyTorch forward exactly."""
    image = image.astype(jnp.float32)
    r = image[:, 0:1]
    g = image[:, 1:2]
    b = image[:, 2:3]
    max_c = jnp.max(image, axis=1, keepdims=True)
    arg = jnp.argmax(image, axis=1, keepdims=True)
    min_c = jnp.min(image, axis=1, keepdims=True)
    c = max_c - min_c
    h = jnp.where(arg == 0, jnp.mod((g - b) / (c + EPS), 6.0), 0.0)
    h = jnp.where(arg == 1, (b - r) / (c + EPS) + 2.0, h)
    h = jnp.where(arg == 2, (r - g) / (c + EPS) + 4.0, h)
    s = jnp.where(c != 0.0, c / (1.0 - jnp.abs(max_c + min_c - 1.0)), 0.0)
    l = (max_c + min_c) / 2.0
    chans = []
    for nval in (5.0, 3.0, 1.0):
        k = jnp.mod(nval + h, 6.0)
        chans.append(1.0 - jnp.clip(jnp.minimum(k, 4.0 - k), 0.0, 1.0))
    hh = jnp.concatenate(chans, axis=1)
    hs = lambda v: jnp.clip(v * SLOPE - 0.01, 0.0, 1.0)
    color_mask = hs(s - color_thr)
    black_mask = hs(black_thr - l)
    white_mask = hs(l - white_thr)
    cond = (color_mask == 1.0) & (black_mask == 0.0) & (white_mask == 0.0)
    return jnp.where(cond, hh, jnp.broadcast_to(l, hh.shape))


if __name__ == "__main__":
    key = jax.random.PRNGKey(0)
    image = jax.random.uniform(key, (2, 3, 16, 16), dtype=jnp.float32)

    color_thr, black_thr, white_thr = 0.04, 0.1, 0.9

    out = advanced_hsv_alt(image, color_thr, black_thr, white_thr)
    out = jax.block_until_ready(out)

    ref = _reference_jax(image, color_thr, black_thr, white_thr)
    assert out.shape == (2, 3, 16, 16)
    assert jnp.allclose(out, ref, atol=1e-5, rtol=1e-5), "mismatch vs reference"
    print("KERNEL_OK")
</pallas_src>

<mosaic_0001>
module attributes {stable_mosaic.version = 11 : i64} {
  func.func @_advanced_hsv_kernel(%arg0: i32, %arg1: i32, %arg2: memref<3xf32, #tpu.memory_space<smem>>, %arg3: memref<1x3x16x16xf32, #tpu.memory_space<vmem>>, %arg4: memref<1x3x16x16xf32, #tpu.memory_space<vmem>>) attributes {dimension_semantics = [#tpu.dimension_semantics<parallel>, #tpu.dimension_semantics<parallel>], iteration_bounds = array<i64: 2, 1>, scalar_prefetch = 0 : i64, scratch_operands = 0 : i64, tpu.core_type = #tpu.core_type<tc>, window_params = [{transform_indices = @transform_0, window_bounds = array<i64: 3>}, {transform_indices = @transform_1, window_bounds = array<i64: 1, 3, 16, 16>}, {transform_indices = @transform_2, window_bounds = array<i64: 1, 3, 16, 16>}]} {
    %c0 = arith.constant 0 : index
    %0 = memref.load %arg2[%c0] : memref<3xf32, #tpu.memory_space<smem>>
    %c1 = arith.constant 1 : index
    %1 = memref.load %arg2[%c1] : memref<3xf32, #tpu.memory_space<smem>>
    %c2 = arith.constant 2 : index
    %2 = memref.load %arg2[%c2] : memref<3xf32, #tpu.memory_space<smem>>
    %c0_0 = arith.constant 0 : index
    %c0_1 = arith.constant 0 : index
    %c0_2 = arith.constant 0 : index
    %c0_3 = arith.constant 0 : index
    %3 = vector.load %arg3[%c0_0, %c0_1, %c0_2, %c0_3] : memref<1x3x16x16xf32, #tpu.memory_space<vmem>>, vector<1x1x16x16xf32>
    %4 = vector.shape_cast %3 : vector<1x1x16x16xf32> to vector<16x16xf32>
    %c0_4 = arith.constant 0 : index
    %c1_5 = arith.constant 1 : index
    %c0_6 = arith.constant 0 : index
    %c0_7 = arith.constant 0 : index
    %5 = vector.load %arg3[%c0_4, %c1_5, %c0_6, %c0_7] : memref<1x3x16x16xf32, #tpu.memory_space<vmem>>, vector<1x1x16x16xf32>
    %6 = vector.shape_cast %5 : vector<1x1x16x16xf32> to vector<16x16xf32>
    %c0_8 = arith.constant 0 : index
    %c2_9 = arith.constant 2 : index
    %c0_10 = arith.constant 0 : index
    %c0_11 = arith.constant 0 : index
    %7 = vector.load %arg3[%c0_8, %c2_9, %c0_10, %c0_11] : memref<1x3x16x16xf32, #tpu.memory_space<vmem>>, vector<1x1x16x16xf32>
    %8 = vector.shape_cast %7 : vector<1x1x16x16xf32> to vector<16x16xf32>
    %9 = arith.maximumf %4, %6 : vector<16x16xf32>
    %10 = arith.maximumf %9, %8 : vector<16x16xf32>
    %11 = arith.minimumf %4, %6 : vector<16x16xf32>
    %12 = arith.minimumf %11, %8 : vector<16x16xf32>
    %13 = arith.cmpf oge, %4, %6 : vector<16x16xf32>
    %14 = arith.cmpf oge, %4, %8 : vector<16x16xf32>
    %15 = arith.andi %13, %14 : vector<16x16xi1>
    %cst = arith.constant dense<true> : vector<16x16xi1>
    %16 = arith.xori %15, %cst : vector<16x16xi1>
    %17 = arith.cmpf oge, %6, %8 : vector<16x16xf32>
    %18 = arith.andi %16, %17 : vector<16x16xi1>
    %19 = arith.ori %15, %18 : vector<16x16xi1>
    %cst_12 = arith.constant dense<true> : vector<16x16xi1>
    %20 = arith.xori %19, %cst_12 : vector<16x16xi1>
    %21 = arith.subf %10, %12 : vector<16x16xf32>
    %cst_13 = arith.constant 9.99999971E-10 : f32
    %22 = vector.broadcast %cst_13 : f32 to vector<16x16xf32>
    %23 = arith.addf %21, %22 : vector<16x16xf32>
    %cst_14 = arith.constant 1.000000e+00 : f32
    %24 = vector.broadcast %cst_14 : f32 to vector<16x16xf32>
    %25 = arith.divf %24, %23 : vector<16x16xf32>
    %cst_15 = arith.constant 0.000000e+00 : f32
    %26 = vector.broadcast %cst_15 : f32 to vector<16x16xf32>
    %27 = arith.subf %6, %8 : vector<16x16xf32>
    %28 = arith.mulf %27, %25 : vector<16x16xf32>
    %cst_16 = arith.constant 0.000000e+00 : f32
    %29 = vector.broadcast %cst_16 : f32 to vector<16x16xf32>
    %30 = arith.cmpf olt, %28, %29 : vector<16x16xf32>
    %cst_17 = arith.constant 6.000000e+00 : f32
    %31 = vector.broadcast %cst_17 : f32 to vector<16x16xf32>
    %32 = arith.addf %28, %31 : vector<16x16xf32>
    %33 = arith.select %30, %32, %28 : vector<16x16xi1>, vector<16x16xf32>
    %34 = arith.select %15, %33, %26 : vector<16x16xi1>, vector<16x16xf32>
    %35 = arith.subf %8, %4 : vector<16x16xf32>
    %36 = arith.mulf %35, %25 : vector<16x16xf32>
    %cst_18 = arith.constant 2.000000e+00 : f32
    %37 = vector.broadcast %cst_18 : f32 to vector<16x16xf32>
    %38 = arith.addf %36, %37 : vector<16x16xf32>
    %39 = arith.select %18, %38, %34 : vector<16x16xi1>, vector<16x16xf32>
    %40 = arith.subf %4, %6 : vector<16x16xf32>
    %41 = arith.mulf %40, %25 : vector<16x16xf32>
    %cst_19 = arith.constant 4.000000e+00 : f32
    %42 = vector.broadcast %cst_19 : f32 to vector<16x16xf32>
    %43 = arith.addf %41, %42 : vector<16x16xf32>
    %44 = arith.select %20, %43, %39 : vector<16x16xi1>, vector<16x16xf32>
    %cst_20 = arith.constant 0.000000e+00 : f32
    %45 = vector.broadcast %cst_20 : f32 to vector<16x16xf32>
    %46 = arith.cmpf one, %21, %45 : vector<16x16xf32>
    %47 = arith.addf %10, %12 : vector<16x16xf32>
    %cst_21 = arith.constant 1.000000e+00 : f32
    %48 = vector.broadcast %cst_21 : f32 to vector<16x16xf32>
    %49 = arith.subf %47, %48 : vector<16x16xf32>
    %50 = math.absf %49 : vector<16x16xf32>
    %cst_22 = arith.constant 1.000000e+00 : f32
    %51 = vector.broadcast %cst_22 : f32 to vector<16x16xf32>
    %52 = arith.subf %51, %50 : vector<16x16xf32>
    %53 = arith.divf %21, %52 : vector<16x16xf32>
    %54 = arith.select %46, %53, %26 : vector<16x16xi1>, vector<16x16xf32>
    %55 = arith.addf %10, %12 : vector<16x16xf32>
    %cst_23 = arith.constant 5.000000e-01 : f32
    %56 = vector.broadcast %cst_23 : f32 to vector<16x16xf32>
    %57 = arith.mulf %55, %56 : vector<16x16xf32>
    %58 = vector.broadcast %0 : f32 to vector<16x16xf32>
    %59 = arith.subf %54, %58 : vector<16x16xf32>
    %cst_24 = arith.constant 1.000000e+03 : f32
    %60 = vector.broadcast %cst_24 : f32 to vector<16x16xf32>
    %61 = arith.mulf %59, %60 : vector<16x16xf32>
    %cst_25 = arith.constant 0.00999999977 : f32
    %62 = vector.broadcast %cst_25 : f32 to vector<16x16xf32>
    %63 = arith.subf %61, %62 : vector<16x16xf32>
    %cst_26 = arith.constant 0.000000e+00 : f32
    %cst_27 = arith.constant 1.000000e+00 : f32
    %64 = vector.broadcast %cst_26 : f32 to vector<16x16xf32>
    %65 = arith.maximumf %64, %63 : vector<16x16xf32>
    %66 = vector.broadcast %cst_27 : f32 to vector<16x16xf32>
    %67 = arith.minimumf %66, %65 : vector<16x16xf32>
    %cst_28 = arith.constant 1.000000e+00 : f32
    %68 = vector.broadcast %cst_28 : f32 to vector<16x16xf32>
    %69 = arith.cmpf oeq, %67, %68 : vector<16x16xf32>
    %70 = vector.broadcast %1 : f32 to vector<16x16xf32>
    %71 = arith.subf %70, %57 : vector<16x16xf32>
    %cst_29 = arith.constant 1.000000e+03 : f32
    %72 = vector.broadcast %cst_29 : f32 to vector<16x16xf32>
    %73 = arith.mulf %71, %72 : vector<16x16xf32>
    %cst_30 = arith.constant 0.00999999977 : f32
    %74 = vector.broadcast %cst_30 : f32 to vector<16x16xf32>
    %75 = arith.subf %73, %74 : vector<16x16xf32>
    %cst_31 = arith.constant 0.000000e+00 : f32
    %cst_32 = arith.constant 1.000000e+00 : f32
    %76 = vector.broadcast %cst_31 : f32 to vector<16x16xf32>
    %77 = arith.maximumf %76, %75 : vector<16x16xf32>
    %78 = vector.broadcast %cst_32 : f32 to vector<16x16xf32>
    %79 = arith.minimumf %78, %77 : vector<16x16xf32>
    %cst_33 = arith.constant 0.000000e+00 : f32
    %80 = vector.broadcast %cst_33 : f32 to vector<16x16xf32>
    %81 = arith.cmpf oeq, %79, %80 : vector<16x16xf32>
    %82 = arith.andi %69, %81 : vector<16x16xi1>
    %83 = vector.broadcast %2 : f32 to vector<16x16xf32>
    %84 = arith.subf %57, %83 : vector<16x16xf32>
    %cst_34 = arith.constant 1.000000e+03 : f32
    %85 = vector.broadcast %cst_34 : f32 to vector<16x16xf32>
    %86 = arith.mulf %84, %85 : vector<16x16xf32>
    %cst_35 = arith.constant 0.00999999977 : f32
    %87 = vector.broadcast %cst_35 : f32 to vector<16x16xf32>
    %88 = arith.subf %86, %87 : vector<16x16xf32>
    %cst_36 = arith.constant 0.000000e+00 : f32
    %cst_37 = arith.constant 1.000000e+00 : f32
    %89 = vector.broadcast %cst_36 : f32 to vector<16x16xf32>
    %90 = arith.maximumf %89, %88 : vector<16x16xf32>
    %91 = vector.broadcast %cst_37 : f32 to vector<16x16xf32>
    %92 = arith.minimumf %91, %90 : vector<16x16xf32>
    %cst_38 = arith.constant 0.000000e+00 : f32
    %93 = vector.broadcast %cst_38 : f32 to vector<16x16xf32>
    %94 = arith.cmpf oeq, %92, %93 : vector<16x16xf32>
    %95 = arith.andi %82, %94 : vector<16x16xi1>
    %cst_39 = arith.constant 5.000000e+00 : f32
    %96 = vector.broadcast %cst_39 : f32 to vector<16x16xf32>
    %97 = arith.addf %96, %44 : vector<16x16xf32>
    %cst_40 = arith.constant 6.000000e+00 : f32
    %98 = vector.broadcast %cst_40 : f32 to vector<16x16xf32>
    %99 = arith.cmpf oge, %97, %98 : vector<16x16xf32>
    %cst_41 = arith.constant 6.000000e+00 : f32
    %100 = vector.broadcast %cst_41 : f32 to vector<16x16xf32>
    %101 = arith.subf %97, %100 : vector<16x16xf32>
    %102 = arith.select %99, %101, %97 : vector<16x16xi1>, vector<16x16xf32>
    %cst_42 = arith.constant 4.000000e+00 : f32
    %103 = vector.broadcast %cst_42 : f32 to vector<16x16xf32>
    %104 = arith.subf %103, %102 : vector<16x16xf32>
    %105 = arith.minimumf %102, %104 : vector<16x16xf32>
    %cst_43 = arith.constant 0.000000e+00 : f32
    %cst_44 = arith.constant 1.000000e+00 : f32
    %106 = vector.broadcast %cst_43 : f32 to vector<16x16xf32>
    %107 = arith.maximumf %106, %105 : vector<16x16xf32>
    %108 = vector.broadcast %cst_44 : f32 to vector<16x16xf32>
    %109 = arith.minimumf %108, %107 : vector<16x16xf32>
    %cst_45 = arith.constant 1.000000e+00 : f32
    %110 = vector.broadcast %cst_45 : f32 to vector<16x16xf32>
    %111 = arith.subf %110, %109 : vector<16x16xf32>
    %112 = arith.select %95, %111, %57 : vector<16x16xi1>, vector<16x16xf32>
    %c0_46 = arith.constant 0 : index
    %c0_47 = arith.constant 0 : index
    %c0_48 = arith.constant 0 : index
    %c0_49 = arith.constant 0 : index
    %113 = vector.load %arg4[%c0_46, %c0_47, %c0_48, %c0_49] : memref<1x3x16x16xf32, #tpu.memory_space<vmem>>, vector<1x1x16x16xf32>
    %114 = vector.shape_cast %113 : vector<1x1x16x16xf32> to vector<16x16xf32>
    %115 = vector.shape_cast %112 : vector<16x16xf32> to vector<1x1x16x16xf32>
    tpu.vector_store %arg4[%c0_46, %c0_47, %c0_48, %c0_49], %115 {strides = array<i32>} : memref<1x3x16x16xf32, #tpu.memory_space<vmem>>, vector<1x1x16x16xf32>,
    %cst_50 = arith.constant 3.000000e+00 : f32
    %116 = vector.broadcast %cst_50 : f32 to vector<16x16xf32>
    %117 = arith.addf %116, %44 : vector<16x16xf32>
    %cst_51 = arith.constant 6.000000e+00 : f32
    %118 = vector.broadcast %cst_51 : f32 to vector<16x16xf32>
    %119 = arith.cmpf oge, %117, %118 : vector<16x16xf32>
    %cst_52 = arith.constant 6.000000e+00 : f32
    %120 = vector.broadcast %cst_52 : f32 to vector<16x16xf32>
    %121 = arith.subf %117, %120 : vector<16x16xf32>
    %122 = arith.select %119, %121, %117 : vector<16x16xi1>, vector<16x16xf32>
    %cst_53 = arith.constant 4.000000e+00 : f32
    %123 = vector.broadcast %cst_53 : f32 to vector<16x16xf32>
    %124 = arith.subf %123, %122 : vector<16x16xf32>
    %125 = arith.minimumf %122, %124 : vector<16x16xf32>
    %cst_54 = arith.constant 0.000000e+00 : f32
    %cst_55 = arith.constant 1.000000e+00 : f32
    %126 = vector.broadcast %cst_54 : f32 to vector<16x16xf32>
    %127 = arith.maximumf %126, %125 : vector<16x16xf32>
    %128 = vector.broadcast %cst_55 : f32 to vector<16x16xf32>
    %129 = arith.minimumf %128, %127 : vector<16x16xf32>
    %cst_56 = arith.constant 1.000000e+00 : f32
    %130 = vector.broadcast %cst_56 : f32 to vector<16x16xf32>
    %131 = arith.subf %130, %129 : vector<16x16xf32>
    %132 = arith.select %95, %131, %57 : vector<16x16xi1>, vector<16x16xf32>
    %c0_57 = arith.constant 0 : index
    %c1_58 = arith.constant 1 : index
    %c0_59 = arith.constant 0 : index
    %c0_60 = arith.constant 0 : index
    %133 = vector.load %arg4[%c0_57, %c1_58, %c0_59, %c0_60] : memref<1x3x16x16xf32, #tpu.memory_space<vmem>>, vector<1x1x16x16xf32>
    %134 = vector.shape_cast %133 : vector<1x1x16x16xf32> to vector<16x16xf32>
    %135 = vector.shape_cast %132 : vector<16x16xf32> to vector<1x1x16x16xf32>
    tpu.vector_store %arg4[%c0_57, %c1_58, %c0_59, %c0_60], %135 {strides = array<i32>} : memref<1x3x16x16xf32, #tpu.memory_space<vmem>>, vector<1x1x16x16xf32>,
    %cst_61 = arith.constant 1.000000e+00 : f32
    %136 = vector.broadcast %cst_61 : f32 to vector<16x16xf32>
    %137 = arith.addf %136, %44 : vector<16x16xf32>
    %cst_62 = arith.constant 6.000000e+00 : f32
    %138 = vector.broadcast %cst_62 : f32 to vector<16x16xf32>
    %139 = arith.cmpf oge, %137, %138 : vector<16x16xf32>
    %cst_63 = arith.constant 6.000000e+00 : f32
    %140 = vector.broadcast %cst_63 : f32 to vector<16x16xf32>
    %141 = arith.subf %137, %140 : vector<16x16xf32>
    %142 = arith.select %139, %141, %137 : vector<16x16xi1>, vector<16x16xf32>
    %cst_64 = arith.constant 4.000000e+00 : f32
    %143 = vector.broadcast %cst_64 : f32 to vector<16x16xf32>
    %144 = arith.subf %143, %142 : vector<16x16xf32>
    %145 = arith.minimumf %142, %144 : vector<16x16xf32>
    %cst_65 = arith.constant 0.000000e+00 : f32
    %cst_66 = arith.constant 1.000000e+00 : f32
    %146 = vector.broadcast %cst_65 : f32 to vector<16x16xf32>
    %147 = arith.maximumf %146, %145 : vector<16x16xf32>
    %148 = vector.broadcast %cst_66 : f32 to vector<16x16xf32>
    %149 = arith.minimumf %148, %147 : vector<16x16xf32>
    %cst_67 = arith.constant 1.000000e+00 : f32
    %150 = vector.broadcast %cst_67 : f32 to vector<16x16xf32>
    %151 = arith.subf %150, %149 : vector<16x16xf32>
    %152 = arith.select %95, %151, %57 : vector<16x16xi1>, vector<16x16xf32>
    %c0_68 = arith.constant 0 : index
    %c2_69 = arith.constant 2 : index
    %c0_70 = arith.constant 0 : index
    %c0_71 = arith.constant 0 : index
    %153 = vector.load %arg4[%c0_68, %c2_69, %c0_70, %c0_71] : memref<1x3x16x16xf32, #tpu.memory_space<vmem>>, vector<1x1x16x16xf32>
    %154 = vector.shape_cast %153 : vector<1x1x16x16xf32> to vector<16x16xf32>
    %155 = vector.shape_cast %152 : vector<16x16xf32> to vector<1x1x16x16xf32>
    tpu.vector_store %arg4[%c0_68, %c2_69, %c0_70, %c0_71], %155 {strides = array<i32>} : memref<1x3x16x16xf32, #tpu.memory_space<vmem>>, vector<1x1x16x16xf32>,
    return
  }
  func.func @transform_0(%arg0: i32, %arg1: i32) -> i32 {
    %c0_i32 = arith.constant 0 : i32
    %c0_i32_0 = arith.constant 0 : i32
    return %c0_i32 : i32
  }
  func.func @transform_1(%arg0: i32, %arg1: i32) -> (i32, i32, i32, i32) {
    %c0_i32 = arith.constant 0 : i32
    %c0_i32_0 = arith.constant 0 : i32
    %c0_i32_1 = arith.constant 0 : i32
    return %arg0, %c0_i32, %arg1, %c0_i32_0 : i32, i32, i32, i32
  }
  func.func @transform_2(%arg0: i32, %arg1: i32) -> (i32, i32, i32, i32) {
    %c0_i32 = arith.constant 0 : i32
    %c0_i32_0 = arith.constant 0 : i32
    %c0_i32_1 = arith.constant 0 : i32
    return %arg0, %c0_i32, %arg1, %c0_i32_0 : i32, i32, i32, i32
  }
}

</mosaic_0001>

<bundles_post_ra>
// kernel: tpu_custom_call.1
= control target key start
LH: loop header
LB: loop body
LE: loop exit
PB: predicated region body
PF: predicated region fallthrough
CT: control target
= control target key end

     0   :  { %7 = vsyncpa [#allocation5], 0  ;;  %s1339_s0 = inlined_call_operand.hbm [shape: f32[3], index: 0, kind: input, shape index: {}]   ;;  %s1340_s1 = inlined_call_operand.hbm [shape: f32[2,3,16,16], index: 1, kind: input, shape index: {}]   ;;  %s1341_s2 = inlined_call_operand.hbm [shape: f32[2,3,16,16], index: 2, kind: output, shape index: {}]  }
   0x1   :  { %8 = vsyncpa [#allocation3], 0 }
   0x2   :  { %10 = vsyncpa [#allocation3 + $0x1], 0 }
   0x3   :  { %11 = vsyncpa [#allocation4], 0 }
   0x4   :  { %13 = vsyncpa [#allocation4 + $0x1], 0  ;;  %s847_s9 = smov 0   ;;  %s849_s10 = smov 0  }
   0x5   :  { %s851_s11 = smov 0   ;;  %s853_s12 = smov 0  }
   0x6   :  { %s855_s13 = smov 0   ;;  %s857_s14 = smov 0  }
   0x7 LB: > { %s568_s15 = sadd.s32 4294967295, %s824_s14   ;;  %s569_s16 = sadd.s32 4294967294, %s824_s14   ;;  %s824_s14 = sphi %s857_s14, %s19_s14   ;;  %s820_s13 = sphi %s855_s13, %s1385_s13   ;;  %s816_s12 = sphi %s853_s12, %s1384_s12   ;;  %s812_s11 = sphi %s851_s11, %s1383_s11   ;;  %s808_s10 = sphi %s849_s10, %s1382_s10   ;;  %s804_s9 = sphi %s847_s9, %s1381_s9  }
   0x8   : > { %s61_s17 = sadd.s32 1, %s812_s11  ;;  %p68_p0 = scmp.ne.s32.totalorder %s812_s11, %s808_s10 }
   0x9   : > { %p69_p1 = scmp.eq.s32.totalorder %s824_s14, 0  ;;  %p74_p2 = scmp.ne.s32.totalorder %s808_s10, %s804_s9 }
   0xa   : > { %p885_p3 = scmp.eq.s32.totalorder %s568_s15, 0  ;;  %p100_p4 = scmp.eq.s32.totalorder %s568_s15, 1 }
   0xb   : > { %p889_p5 = por %p69_p1, %p68_p0  ;;  %p106_p6 = scmp.eq.s32.totalorder %s569_s16, 1 }
   0xc   : > { %p895_p7 = por %p885_p3, %p74_p2  ;;  %p899_p8 = por %p100_p4, %p68_p0 }
   0xd   : > { %p903_p9 = por %p106_p6, %p74_p2  ;;  %p570_p10 = scmp.ge.s32.totalorder %s824_s14, 1 }
   0xe   : > { %p113_p11 = scmp.lt.s32.totalorder %s824_s14, 3  ;;  %s125_s25 = sshll.u32 %s1339_s0, 4  ;;  %s126_s25 = int_to_ptr.hbm [resolvable:$true] %s125_s25 }
   0xf   : > { %p572_p13 = scmp.ge.s32.totalorder %s824_s14, 2  ;;  %p628_p0 = scmp.lt.s32.totalorder %s824_s14, 2 }
  0x10   : > { %p912_p12 = pnand %p570_p10, %p113_p11  ;;  %s31_s28 = sadd.s32 1, %s820_s13 }
  0x11   : > { %p922_p2 = pnand %p628_p0, %p889_p5  ;;  %p33_p6 = scmp.ge.s32.totalorder %s31_s28, 2 }
  0x12   : > { %p615_p1 = pneg %p912_p12  ;;  %s136_s29 = sand.u32 1, %s812_s11  }
  0x13   : > { %s826_s30 = smov [#allocation2]   ;;  %s1387_s28 = smov (%p33_p6, %s31_s28), 0 }
  0x14   : > { %p616_p4 = pnand %p615_p1, %p885_p3  ;;  %s603_s3 = smul.u32 48, %s136_s29 }
  0x15   : > { %s56_s4 = ssub.s32 %s820_s13, %s1387_s28  ;;  %s604_s5 = smul.u32 48, %s820_s13 }
  0x16   : > { %618 = dma.hbm_to_smem (!%p616_p4), %s126_s25, 16, %s826_s30, [#allocation5]  }
  0x17   : > { %p59_p10 = scmp.eq.s32.totalorder %s56_s4, 0  ;;  %s147_s8 = scalar_lea.hbm %s1340_s1, %s604_s5 }
  0x18   : > { %s140_s15 = scalar_lea.vmem [#allocation6], %s603_s3  ;;  %s148_s23 = sshll.u32 %s147_s8, 4  ;;  %s149_s23 = int_to_ptr.hbm [resolvable:$true] %s148_s23 }
  0x19   : > { %s150_s16 = sshll.u32 %s140_s15, 4  ;;  %s137_s24 = scalar_lea.sflag [#allocation3], %s136_s29  ;;  %s151_s16 = int_to_ptr.vmem [resolvable:$true] %s150_s16 }
  0x1a   : > { %s941_s19 = scalar_select %p59_p10, %s812_s11, %s61_s17  }
  0x1b   : > { %s827_s25 = smov 128   ;;  %s828_s30 = smov 8  }
  0x1c   : > { %622 = dma.hbm_to_vmem [thread:$0]  (!%p922_p2), %s149_s23, 768, %s151_s16, %s137_s24, %s827_s25, %s827_s25, %s828_s30  }
  0x1d   : > { %162 = sbr.rel (%p912_p12) target bundleno = 110 (0x6e), region = 28 }
  0x22   : > { %791 = dma.done.wait (%p885_p3), [#allocation5], 16  }
  0x23   : > { %793 = vsyncadd (%p885_p3), [#allocation5], 4294967280  ;;  %s952_s17 = sand.u32 1, %s808_s10  }
  0x24   : > { %s605_s29 = smul.u32 48, %s952_s17  ;;  %s170_s3 = scalar_lea.sflag [#allocation3], %s952_s17 }
  0x26   : > { %s173_s27 = scalar_lea.vmem [#allocation6], %s605_s29 }
  0x27   : > { %795 = dma.done.wait (%p895_p7), %s170_s3, 768  }
  0x28   : > { %797 = vsyncadd (%p895_p7), %s170_s3, 4294966528 }
  0x29   : > { %179 = sfence }
  0x2a   : > { %v962_v0 = vld [vmem:[%s173_s27] sm:$0xff]  ;;  %v964_v1 = vld [vmem:[%s173_s27 + $0x10] sm:$0xff]  ;;  %s968_s18 = sld [smem:[#allocation2 + $0x1]]  ;;  %v974_v5 = vld [vmem:[%s173_s27 + $0x8] sm:$0xff]  ;;  %vm829_vm11 = vmmov 1   ;;  %s1264_s4 = scalar_lea.vmem [#allocation7], %s605_s29 }
  0x2b   : > { %v966_v2 = vld [vmem:[%s173_s27 + $0x20] sm:$0xff]  ;;  %v209_v3 = vmax.f32 %v962_v0, %v964_v1  ;;  %v213_v4 = vmin.f32 %v962_v0, %v964_v1  ;;  %v976_v6 = vld [vmem:[%s173_s27 + $0x18] sm:$0xff]  ;;  %s978_s20 = sld [smem:[#allocation2 + $0x2]]  ;;  %v980_v7 = vld [vmem:[%s173_s27 + $0x28] sm:$0xff]  ;;  %vm217_vm0 = vcmp.ge.f32.partialorder %v962_v0, %v964_v1  ;;  %v287_v30 = vsub.f32 %v962_v0, %v964_v1  ;;  %s606_s5 = smul.u32 48, %s816_s12 }
  0x2c   : > { %v210_v10 = vmax.f32 %v974_v5, %v976_v6  ;;  %v214_v11 = vmin.f32 %v974_v5, %v976_v6  ;;  %s988_s26 = sld [smem:[#allocation2]]  ;;  %vm219_vm1 = vcmp.ge.f32.partialorder %v962_v0, %v966_v2  ;;  %v267_v23 = vsub.f32 %v964_v1, %v966_v2  ;;  %s466_s8 = sshll.u32 %s1264_s4, 4  ;;  %s467_s8 = int_to_ptr.vmem [resolvable:$true] %s466_s8 }
  0x2d   : > { %v211_v8 = vmax.f32 %v209_v3, %v966_v2  ;;  %v215_v9 = vmin.f32 %v213_v4, %v966_v2  ;;  %v279_v24 = vsub.f32 %v966_v2, %v962_v0  ;;  %vm218_vm2 = vcmp.ge.f32.partialorder %v974_v5, %v976_v6  ;;  %vm1050_vm6 = vmand %vm217_vm0, %vm219_vm1  ;;  %s465_s7 = scalar_lea.hbm %s1341_s2, %s606_s5  ;;  %s452_s16 = scalar_lea.sflag [#allocation4], %s952_s17 }
  0x2e   : > { %v212_v14 = vmax.f32 %v210_v10, %v980_v7  ;;  %v216_v15 = vmin.f32 %v214_v11, %v980_v7  ;;  %vm225_vm3 = vcmp.ge.f32.partialorder %v964_v1, %v966_v2  ;;  %vm220_vm4 = vcmp.ge.f32.partialorder %v974_v5, %v980_v7  ;;  %vm1072_vm12 = vmxor %vm1050_vm6, %vm829_vm11  ;;  %s468_s15 = sshll.u32 %s465_s7, 4  ;;  %s758_s29 = scalar_lea.hbm %s1341_s2, 96  ;;  %s469_s15 = int_to_ptr.hbm [resolvable:$true] %s468_s15 }
  0x2f   : > { %v990_v12 = vsub.f32 %v211_v8, %v215_v9  ;;  %v297_v13 = vadd.f32 %v215_v9, %v211_v8  ;;  %v268_v36 = vsub.f32 %v976_v6, %v980_v7  ;;  %v280_v39 = vsub.f32 %v980_v7, %v974_v5  ;;  %vm1095_vm0 = vmand %vm218_vm2, %vm220_vm4  ;;  %s752_s23 = sshra.s32 %s469_s15, 4  ;;  %s753_s23 = int_to_ptr.hbm [resolvable:$true] %s752_s23 }
  0x30   : > { %v352_v19 = vstv %s968_s18  ;;  %v1005_v21 = vsub.f32 %v212_v14, %v216_v15  ;;  %v298_v22 = vadd.f32 %v216_v15, %v212_v14  ;;  %v288_v40 = vsub.f32 %v974_v5, %v976_v6  ;;  %s754_s24 = scalar_lea.hbm %s753_s23, 48  ;;  %p759_p11 = scmp.lt.s32.totalorder %s753_s23, %s1341_s2 }
  0x31   : > { %v999_v16 = vadd.f32 1e-09, %v990_v12  ;;  %v582_v17 = vadd.f32 -1.0, %v297_v13  ;;  %v1001_v18 = vmul.f32 0.5, %v297_v13  ;;  %v367_v20 = vstv %s978_s20  ;;  %p755_p3 = scmp.ne.s32.totalorder %s753_s23, %s754_s24  ;;  %p760_p12 = scmp.lt.s32.totalorder %s758_s29, %s754_s24 }
  0x32   : > { %v1019_v28 = vadd.f32 1e-09, %v1005_v21  ;;  %v583_v31 = vadd.f32 -1.0, %v298_v22  ;;  %v339_v35 = vstv %s988_s26  ;;  %v1083_v60 = vmul.f32 0.5, %v298_v22 }
  0x33   : > { %685 = vrcp.f32 %v999_v16  ;;  %v301_v25 = vand.u32 2147483647, %v582_v17  ;;  %v353_v26 = vsub.f32 %v352_v19, %v1001_v18  ;;  %v368_v27 = vsub.f32 %v1001_v18, %v367_v20  ;;  %p756_p5 = pnand %p755_p3, %p899_p8  ;;  %p761_p0 = por %p760_p12, %p759_p11 }
  0x34   : > { %v246_v29 = vand.u32 2147483647, %v999_v16  ;;  %687 = vrcp.f32 %v1019_v28  ;;  %v302_v37 = vand.u32 2147483647, %v583_v31  ;;  %v248_v38 = vand.u32 2147483648, %v999_v16 }
  0x35   : > { %v1028_v32 = vsub.f32 1.0, %v301_v25  ;;  %v355_v33 = vmul.f32 1000.0, %v353_v26  ;;  %v370_v34 = vmul.f32 1000.0, %v368_v27  ;;  %vm242_vm5 = vweird.f32 %v999_v16  ;;  %p757_p7 = pneg %p756_p5 }
  0x36   : > { %v261_v44 = vand.u32 2147483647, %v1019_v28  ;;  %vm1055_vm7 = vcmp.eq.f32.partialorder %v246_v29, 8.507059e+37  ;;  %v263_v49 = vand.u32 2147483648, %v1019_v28  ;;  %v1062_v53 = vsub.f32 1.0, %v302_v37 }
  0x37   : > { %689 = vrcp.f32 %v1028_v32  ;;  %v586_v42 = vadd.f32 -0.01, %v355_v33  ;;  %v588_v43 = vadd.f32 -0.01, %v370_v34  ;;  %v314_v48 = vand.u32 2147483647, %v1028_v32  ;;  %p762_p1 = pnand %p761_p0, %p757_p7 }
  0x38   : > { %v316_v50 = vand.u32 2147483648, %v1028_v32  ;;  %v249_v56 = vor.u32 1.1754944e-38, %v248_v38  ;;  %vm257_vm10 = vweird.f32 %v1019_v28  ;;  %vm310_vm13 = vweird.f32 %v1028_v32 }
  0x39   : > { %v686_v41 = vpop.eup %685  ;;  %v359_v51 = vmax.f32 %v586_v42, 0.0  ;;  %v374_v52 = vmax.f32 %v588_v43, 0.0  ;;  %vm1079_vm14 = vcmp.eq.f32.partialorder %v261_v44, 8.507059e+37  ;;  %vm1085_vm15 = vcmp.eq.f32.partialorder %v314_v48, 8.507059e+37 }
  0x3a   : > { %v238_v46 = vmul.f32 %v686_v41, %v999_v16  ;;  %v1064_v54 = vpop.eup %687  ;;  %vm243_vm8 = vweird.f32 %v686_v41  ;;  %v264_v4 = vor.u32 1.1754944e-38, %v263_v49  ;;  %691 = vrcp.f32 %v1062_v53 }
  0x3b   : > { %v253_v58 = vmul.f32 %v1064_v54, %v1019_v28  ;;  %vm1103_vm1 = vmor %vm242_vm5, %vm243_vm8  ;;  %v317_v10 = vor.u32 1.1754944e-38, %v316_v50  ;;  %v1108_v11 = vmin.f32 %v359_v51, 1.0  ;;  %v1110_v13 = vmin.f32 %v374_v52, 1.0 }
  0x3c   : > { %v239_v55 = vsub.f32 1.0, %v238_v46  ;;  %vm295_vm2 = vcmp.ne.f32.partialorder %v990_v12, 0.0  ;;  %vm258_vm9 = vweird.f32 %v1064_v54  ;;  %vm1119_vm5 = vmand %vm1072_vm12, %vm225_vm3  ;;  %v331_v22 = vand.u32 2147483648, %v1062_v53 }
  0x3d   : > { %v690_v61 = vpop.eup %689  ;;  %v254_v15 = vsub.f32 1.0, %v253_v58  ;;  %v354_v25 = vsub.f32 %v352_v19, %v1083_v60  ;;  %v369_v26 = vsub.f32 %v1083_v60, %v367_v20  ;;  %vm1135_vm8 = vmxor %vm1095_vm0, %vm829_vm11  ;;  %v329_v33 = vand.u32 2147483647, %v1062_v53 }
  0x3e   : > { %v240_v62 = vmul.f32 %v686_v41, %v239_v55  ;;  %v306_v9 = vmul.f32 %v690_v61, %v1028_v32  ;;  %vm311_vm4 = vweird.f32 %v690_v61  ;;  %vm1146_vm12 = vmor %vm257_vm10, %vm258_vm9  ;;  %v332_v0 = vor.u32 1.1754944e-38, %v331_v22 }
  0x3f   : > { %v255_v31 = vmul.f32 %v1064_v54, %v254_v15  ;;  %v356_v37 = vmul.f32 1000.0, %v354_v25  ;;  %v371_v38 = vmul.f32 1000.0, %v369_v26  ;;  %vm229_vm9 = vmor %vm1050_vm6, %vm1119_vm5 }
  0x40   : > { %v241_v14 = vadd.f32 %v686_v41, %v240_v62  ;;  %v307_v17 = vsub.f32 1.0, %v306_v9  ;;  %vm231_vm3 = vmxor %vm229_vm9, %vm829_vm11 }
  0x41   : > { %v256_v46 = vadd.f32 %v1064_v54, %v255_v31 }
  0x42   : > { %v245_v27 = vsel %vm1103_vm1, %v686_v41, %v241_v14  ;;  %v308_v20 = vmul.f32 %v690_v61, %v307_v17  ;;  %v1150_v41 = vpop.eup %691 }
  0x43   : > { %v250_v19 = vsel %vm1055_vm7, %v249_v56, %v245_v27  ;;  %vm1164_vm7 = vmor %vm310_vm13, %vm311_vm4  ;;  %vm326_vm10 = vweird.f32 %v1150_v41  ;;  %vm1371_vm13 = vcmp.ge.f32.partialorder %v976_v6, %v980_v7  ;;  %v260_v49 = vsel %vm1146_vm12, %v1064_v54, %v256_v46 }
  0x44   : > { %v269_v42 = vmul.f32 %v267_v23, %v250_v19  ;;  %v281_v43 = vmul.f32 %v279_v24, %v250_v19  ;;  %v289_v28 = vmul.f32 %v287_v30, %v250_v19  ;;  %v309_v2 = vadd.f32 %v690_v61, %v308_v20  ;;  %vm1183_vm4 = vmand %vm1135_vm8, %vm1371_vm13 }
  0x45   : > { %v321_v23 = vmul.f32 %v1150_v41, %v1062_v53  ;;  %v587_v30 = vadd.f32 -0.01, %v356_v37  ;;  %v265_v55 = vsel %vm1079_vm14, %v264_v4, %v260_v49  ;;  %vm296_vm8 = vcmp.ne.f32.partialorder %v1005_v21, 0.0  ;;  %vm230_vm14 = vmor %vm1095_vm0, %vm1183_vm4 }
  0x46   : > { %vm271_vm1 = vcmp.lt.f32.partialorder %v269_v42, 0.0  ;;  %v273_v1 = vadd.f32 6.0, %v269_v42  ;;  %v283_v24 = vadd.f32 2.0, %v281_v43  ;;  %v291_v32 = vadd.f32 4.0, %v289_v28 }
  0x47   : > { %v313_v47 = vsel %vm1164_vm7, %v690_v61, %v309_v2  ;;  %v322_v50 = vsub.f32 1.0, %v321_v23  ;;  %v589_v56 = vadd.f32 -0.01, %v371_v38  ;;  %v270_v54 = vmul.f32 %v268_v36, %v265_v55 }
  0x48   : > { %v275_v51 = vsel %vm271_vm1, %v273_v1, %v269_v42  ;;  %v318_v52 = vsel %vm1085_vm15, %v317_v10, %v313_v47  ;;  %v282_v61 = vmul.f32 %v280_v39, %v265_v55  ;;  %v290_v45 = vmul.f32 %v288_v40, %v265_v55 }
  0x49   : > { %v277_v57 = vsel %vm1050_vm6, %v275_v51, 0.0  ;;  %v319_v58 = vmul.f32 %v318_v52, %v990_v12  ;;  %v323_v62 = vmul.f32 %v1150_v41, %v322_v50  ;;  %v360_v63 = vmax.f32 %v587_v30, 0.0 }
  0x4a   : > { %v285_v59 = vsel %vm1119_vm5, %v283_v24, %v277_v57  ;;  %vm272_vm6 = vcmp.lt.f32.partialorder %v270_v54, 0.0  ;;  %v274_v39 = vadd.f32 6.0, %v270_v54  ;;  %vm363_vm15 = vcmp.eq.f32.partialorder %v1108_v11, 0.0 }
  0x4b   : > { %v293_v36 = vsel %vm231_vm3, %v291_v32, %v285_v59  ;;  %v335_v7 = vsel %vm295_vm2, %v319_v58, 0.0  ;;  %v284_v9 = vadd.f32 2.0, %v282_v61  ;;  %v292_v10 = vadd.f32 4.0, %v290_v45  ;;  %vm232_vm2 = vmxor %vm230_vm14, %vm829_vm11 }
  0x4c   : > { %v340_v4 = vsub.f32 %v335_v7, %v339_v35  ;;  %v382_v8 = vadd.f32 5.0, %v293_v36  ;;  %vm1374_vm5 = vweird.f32 %v1062_v53  ;;  %vm378_vm3 = vcmp.eq.f32.partialorder %v1110_v13, 0.0 }
  0x4d   : > { %vm1224_vm12 = vmor %vm1374_vm5, %vm326_vm10  ;;  %v276_v6 = vsel %vm272_vm6, %v274_v39, %v270_v54  ;;  %v324_v12 = vadd.f32 %v1150_v41, %v323_v62  ;;  %vm330_vm7 = vcmp.eq.f32.partialorder %v329_v33, 8.507059e+37  ;;  %v375_v40 = vmax.f32 %v589_v56, 0.0 }
  0x4e   : > { %v342_v14 = vmul.f32 1000.0, %v340_v4  ;;  %vm384_vm9 = vcmp.ge.f32.partialorder %v382_v8, 6.0  ;;  %v590_v53 = vadd.f32 -6.0, %v382_v8  ;;  %v278_v15 = vsel %vm1095_vm0, %v276_v6, 0.0 }
  0x4f   : > { %v286_v16 = vsel %vm1183_vm4, %v284_v9, %v278_v15  ;;  %v328_v17 = vsel %vm1224_vm12, %v1150_v41, %v324_v12  ;;  %v1243_v22 = vmin.f32 %v360_v63, 1.0  ;;  %v405_v25 = vadd.f32 3.0, %v293_v36 }
  0x50   : > { %v584_v26 = vadd.f32 -0.01, %v342_v14  ;;  %v388_v27 = vsel %vm384_vm9, %v590_v53, %v382_v8  ;;  %v294_v29 = vsel %vm232_vm2, %v292_v10, %v286_v16  ;;  %v333_v31 = vsel %vm330_vm7, %v332_v0, %v328_v17 }
  0x51   : > { %v390_v33 = vsub.f32 4.0, %v388_v27  ;;  %vm402_vm11 = vcmask 130048   ;;  %v334_v3 = vmul.f32 %v333_v31, %v1005_v21  ;;  %v377_v19 = vmin.f32 %v375_v40, 1.0 }
  0x52   : > { %v383_v20 = vadd.f32 5.0, %v294_v29  ;;  %v346_v34 = vmax.f32 %v584_v26, 0.0  ;;  %vm407_vm0 = vcmp.ge.f32.partialorder %v405_v25, 6.0  ;;  %v592_v37 = vadd.f32 -6.0, %v405_v25 }
  0x53   : > { %v406_v38 = vadd.f32 3.0, %v294_v29  ;;  %v392_v42 = vmin.f32 %v388_v27, %v390_v33  ;;  %v336_v41 = vsel %vm296_vm8, %v334_v3, 0.0  ;;  %v428_v32 = vadd.f32 1.0, %v293_v36 }
  0x54   : > { %vm385_vm10 = vcmp.ge.f32.partialorder %v383_v20, 6.0  ;;  %v591_v43 = vadd.f32 -6.0, %v383_v20  ;;  %v348_v28 = vmin.f32 %v346_v34, 1.0  ;;  %v341_v44 = vsub.f32 %v336_v41, %v339_v35 }
  0x55   : > { %v411_v46 = vsel %vm407_vm0, %v592_v37, %v405_v25  ;;  %vm408_vm1 = vcmp.ge.f32.partialorder %v406_v38, 6.0  ;;  %v394_v2 = vmax.f32 %v392_v42, 0.0  ;;  %v593_v1 = vadd.f32 -6.0, %v406_v38 }
  0x56   : > { %v389_v23 = vsel %vm385_vm10, %v591_v43, %v383_v20  ;;  %v413_v0 = vsub.f32 4.0, %v411_v46  ;;  %vm350_vm13 = vcmp.eq.f32.partialorder %v348_v28, 1.0  ;;  %v343_v24 = vmul.f32 1000.0, %v341_v44 }
  0x57   : > { %v391_v30 = vsub.f32 4.0, %v389_v23  ;;  %vm365_vm4 = vmand %vm350_vm13, %vm363_vm15  ;;  %v396_v21 = vmin.f32 %v394_v2, 1.0  ;;  %v412_v48 = vsel %vm408_vm1, %v593_v1, %v406_v38  ;;  %v429_v49 = vadd.f32 1.0, %v294_v29 }
  0x58   : > { %v415_v47 = vmin.f32 %v411_v46, %v413_v0  ;;  %vm1254_vm8 = vmand %vm365_vm4, %vm378_vm3  ;;  %v585_v50 = vadd.f32 -0.01, %v343_v24  ;;  %v414_v52 = vsub.f32 4.0, %v412_v48  ;;  %vm430_vm14 = vcmp.ge.f32.partialorder %v428_v32, 6.0 }
  0x59   : > { %v393_v51 = vmin.f32 %v389_v23, %v391_v30  ;;  %v398_v55 = vsub.f32 1.0, %v396_v21  ;;  %v596_v57 = vadd.f32 -6.0, %v428_v32  ;;  %vm431_vm6 = vcmp.ge.f32.partialorder %v429_v49, 6.0 }
  0x5a   : > { %v417_v56 = vmax.f32 %v415_v47, 0.0  ;;  %v347_v11 = vmax.f32 %v585_v50, 0.0  ;;  %v416_v54 = vmin.f32 %v412_v48, %v414_v52  ;;  %v597_v61 = vadd.f32 -6.0, %v429_v49 }
  0x5b   : > { %v395_v58 = vmax.f32 %v393_v51, 0.0  ;;  %v400_v13 = vsel %vm1254_vm8, %v398_v55, %v1001_v18  ;;  %vm364_vm15 = vcmp.eq.f32.partialorder %v1243_v22, 0.0  ;;  %v434_v45 = vsel %vm430_vm14, %v596_v57, %v428_v32 }
  0x5c   : > { %v419_v59 = vmin.f32 %v417_v56, 1.0  ;;  %403 = vst.msk [vmem:[%s1264_s4] sm:$0xff] %vm402_vm11, %v400_v13  ;;  %v349_v62 = vmin.f32 %v347_v11, 1.0  ;;  %v418_v36 = vmax.f32 %v416_v54, 0.0  ;;  %v436_v7 = vsub.f32 4.0, %v434_v45 }
  0x5d   : > { %v397_v63 = vmin.f32 %v395_v58, 1.0  ;;  %vm379_vm5 = vcmp.eq.f32.partialorder %v377_v19, 0.0  ;;  %v435_v4 = vsel %vm431_vm6, %v597_v61, %v429_v49 }
  0x5e   : > { %v421_v39 = vsub.f32 1.0, %v419_v59  ;;  %vm351_vm12 = vcmp.eq.f32.partialorder %v349_v62, 1.0  ;;  %v420_v9 = vmin.f32 %v418_v36, 1.0  ;;  %v438_v10 = vmin.f32 %v434_v45, %v436_v7 }
  0x5f   : > { %v399_v8 = vsub.f32 1.0, %v397_v63  ;;  %vm366_vm3 = vmand %vm351_vm12, %vm364_vm15  ;;  %v437_v6 = vsub.f32 4.0, %v435_v4 }
  0x60   : > { %v423_v5 = vsel %vm1254_vm8, %v421_v39, %v1001_v18  ;;  %vm1275_vm2 = vmand %vm366_vm3, %vm379_vm5  ;;  %v422_v40 = vsub.f32 1.0, %v420_v9  ;;  %v440_v14 = vmax.f32 %v438_v10, 0.0 }
  0x61   : > { %594 = vst.msk [vmem:[%s1264_s4 + $0x10] sm:$0xff] %vm402_vm11, %v423_v5  ;;  %v401_v53 = vsel %vm1275_vm2, %v399_v8, %v1083_v60  ;;  %v439_v15 = vmin.f32 %v435_v4, %v437_v6 }
  0x62   : > { %404 = vst.msk [vmem:[%s1264_s4 + $0x8] sm:$0xff] %vm402_vm11, %v401_v53  ;;  %v424_v16 = vsel %vm1275_vm2, %v422_v40, %v1083_v60  ;;  %v442_v17 = vmin.f32 %v440_v14, 1.0 }
  0x63   : > { %595 = vst.msk [vmem:[%s1264_s4 + $0x18] sm:$0xff] %vm402_vm11, %v424_v16  ;;  %v441_v22 = vmax.f32 %v439_v15, 0.0 }
  0x64   : > { %v444_v25 = vsub.f32 1.0, %v442_v17 }
  0x65   : > { %v443_v26 = vmin.f32 %v441_v22, 1.0 }
  0x66   : > { %v446_v27 = vsel %vm1254_vm8, %v444_v25, %v1001_v18 }
  0x67   : > { %598 = vst.msk [vmem:[%s1264_s4 + $0x20] sm:$0xff] %vm402_vm11, %v446_v27  ;;  %v445_v29 = vsub.f32 1.0, %v443_v26 }
  0x69   : > { %v447_v31 = vsel %vm1275_vm2, %v445_v29, %v1083_v60 }
  0x6a   : > { %599 = vst.msk [vmem:[%s1264_s4 + $0x28] sm:$0xff] %vm402_vm11, %v447_v31 }
  0x6b   : > { %765 = shalt.err (!%p762_p1)
}
  0x6c   : > { %s830_s17 = smov 128   ;;  %s831_s18 = smov 8  }
  0x6d   : > { %613 = dma.vmem_to_hbm [thread:$0]  (%p899_p8), %s467_s8, 768, %s469_s15, %s452_s16, %s830_s17, %s830_s17, %s831_s18  }
  0x6e PF: > { %s483_s20 = sand.u32 1, %s804_s9   ;;  %p624_p2 = pnand %p572_p13, %p903_p9 }
  0x6f   : > { %s484_s26 = scalar_lea.sflag [#allocation4], %s483_s20 }
  0x70   : > { %p625_p4 = pneg %p624_p2 }
  0x72   : > { %799 = dma.done.wait (%p625_p4), %s484_s26, 768  }
  0x73   : > { %801 = vsyncadd (%p625_p4), %s484_s26, 4294966528  ;;  %s19_s14 = sadd.s32 1, %s824_s14   ;;  %s1381_s9 = smov %s808_s10 }
  0x74   : > { %p16_p6 = scmp.ge.s32.totalorder %s19_s14, 4   ;;  %s1382_s10 = smov %s812_s11 }
  0x75   : > { %s1383_s11 = smov %s941_s19  ;;  %s1384_s12 = smov %s820_s13 }
  0x76   : > { %s1385_s13 = smov %s1387_s28  ;;  %18 = sbr.rel (!%p16_p6) target bundleno = 7 (0x7), region = 82 }
  0x7b   :  { %490 = vsyncpa [#allocation3], 1 }
  0x7c   :  { %492 = vsyncpa [#allocation3 + $0x1], 1 }
  0x7d   :  { %493 = vsyncpa [#allocation4], 1 }
  0x7e   :  { %495 = vsyncpa [#allocation4 + $0x1], 1 }
  0x7f   :  { %496 = vsyncpa [#allocation5], 1 }
  0x80   :  { %498 = vsyncpa [#allocation5 + $0x1], 1 }

</bundles_post_ra>
